<compile_context>
chip_gen: v7x
topology: tpu7x:2x2x1
jax: 0.10.0
libtpu: 0.0.40
codegen_flags: <defaults>
</compile_context>

<pallas_src>
import functools

import jax
import jax.numpy as jnp
import numpy as np
from jax import lax
from jax.experimental import pallas as pl
from jax.experimental.pallas import tpu as pltpu

D_XT = 18
FOLD = 64                   # rows folded into the lane axis
LANES = FOLD * D_XT         # 1152 = 9 * 128 -> lane-dense blocks

FEATURE_GROUPS = {
    "coordinate_loss": (0, 1),
    "angle_loss": (2, 3, 4, 5, 6, 7, 8),
    "coordinate_velocity_loss": (9, 10),
    "angular_velocity_loss": (11, 12, 13, 14, 15, 16, 17),
}
_GROUP_NAMES = tuple(FEATURE_GROUPS)
_GROUP_MASK = np.zeros((len(FEATURE_GROUPS), D_XT), np.float32)
for _gi, _idx in enumerate(FEATURE_GROUPS.values()):
    _GROUP_MASK[_gi, list(_idx)] = 1.0
_GROUP_SIZES = np.array([len(i) for i in FEATURE_GROUPS.values()], np.float32)


def _round_up(x, m):
    return ((x + m - 1) // m) * m


@functools.lru_cache(maxsize=1)
def _default_num_cores():
    """2 for v7x-class chips (2 TensorCores per device), 1 for v5e/v6e etc."""
    try:
        kind = jax.devices()[0].device_kind.lower()
    except Exception:
        return 1
    return 2 if "v7" in kind else 1


def _sse_kernel(o_ref, t_ref, out_ref, *, tm, rf, steps_per_core):
    """Accumulate per-lane sums of squared errors into the (8, LANES) out block."""
    c = pl.program_id(0)      # row-range split ("parallel")
    j = pl.program_id(1)      # reduction steps within the range ("arbitrary")

    @pl.when(j == 0)
    def _init():
        out_ref[...] = jnp.zeros_like(out_ref)

    diff = o_ref[...].astype(jnp.float32) - t_ref[...].astype(jnp.float32)
    sq = diff * diff

    base = (c * steps_per_core + j) * tm      # first logical row of this block

    # Hot path: block lies fully inside the logical row range -> no mask work.
    @pl.when(base + tm <= rf)
    def _full_block():
        out_ref[...] += jnp.sum(sq.reshape(tm // 8, 8, LANES), axis=0)

    # Cold path: partial last block or fully out-of-range clamped block.
    @pl.when(base + tm > rf)
    def _edge_block():
        row_ids = lax.broadcasted_iota(jnp.int32, (tm, 1), 0) + base
        masked = jnp.where(row_ids < rf, sq, 0.0)
        out_ref[...] += jnp.sum(masked.reshape(tm // 8, 8, LANES), axis=0)


def _per_feature_sse_folded(out2d, tgt2d, *, tm, num_cores):
    """(rf, LANES) x (rf, LANES) -> (num_cores*8, LANES) partial SSE sums."""
    rf, lanes = out2d.shape
    assert lanes == LANES

    itemsize = jnp.dtype(out2d.dtype).itemsize
    # Minimum sublane tile: 8 for 32-bit, 16 for bf16/f16, 32 for 8-bit dtypes.
    min_rows = max(8, 32 // itemsize)
    tm = max(min_rows, (tm // min_rows) * min_rows)
    tm = min(tm, _round_up(rf, min_rows))

    nblocks = pl.cdiv(rf, tm)
    steps_per_core = pl.cdiv(nblocks, num_cores)

    def in_map(c, j):
        # Clamp so every DMA source block starts inside the array; blocks that
        # are logically out of range are zeroed by the in-kernel edge branch.
        return (jnp.minimum(c * steps_per_core + j, nblocks - 1), 0)

    kernel = functools.partial(
        _sse_kernel, tm=tm, rf=rf, steps_per_core=steps_per_core)

    # Explicit scoped-VMEM budget: double-buffered inputs per core + output
    # accumulators + slack.  Floored at 16 MiB, capped at 64 MiB (v7x per-TC).
    vmem_bytes = (num_cores * 2 * 2 * tm * LANES * itemsize
                  + num_cores * 8 * LANES * 4 + (6 << 20))
    vmem_bytes = int(max(16 << 20, min(vmem_bytes, 64 << 20)))

    return pl.pallas_call(
        kernel,
        out_shape=jax.ShapeDtypeStruct((num_cores * 8, LANES), jnp.float32),
        grid_spec=pltpu.PrefetchScalarGridSpec(
            num_scalar_prefetch=0,
            grid=(num_cores, steps_per_core),
            in_specs=[
                pl.BlockSpec((tm, LANES), in_map),
                pl.BlockSpec((tm, LANES), in_map),
            ],
            out_specs=pl.BlockSpec((8, LANES), lambda c, j: (c, 0)),
        ),
        compiler_params=pltpu.CompilerParams(
            dimension_semantics=("parallel", "arbitrary"),
            vmem_limit_bytes=vmem_bytes,
        ),
    )(out2d, tgt2d)


def _per_feature_sse(outputs, targets, *, tm, num_cores):
    """(B, S, D_XT) inputs -> per-feature sum of squared errors, shape (D_XT,)."""
    b, s, d = outputs.shape
    n_rows = b * s
    out_flat = outputs.reshape(-1)
    tgt_flat = targets.reshape(-1)

    r_main = (n_rows // FOLD) * FOLD    # rows handled by the Pallas kernel
    rf = r_main // FOLD                 # folded (lane-dense) rows
    n_main = r_main * d

    sse = jnp.zeros((D_XT,), jnp.float32)
    if rf > 0:
        o2 = out_flat[:n_main].reshape(rf, LANES)
        t2 = tgt_flat[:n_main].reshape(rf, LANES)
        partial = _per_feature_sse_folded(o2, t2, tm=tm, num_cores=num_cores)
        sse = sse + jnp.sum(partial.reshape(num_cores * 8 * FOLD, D_XT), axis=0)
    if r_main < n_rows:
        # < FOLD leftover rows: negligible work, plain JAX (avoids any padding copy).
        od = out_flat[n_main:].reshape(n_rows - r_main, d).astype(jnp.float32)
        td = tgt_flat[n_main:].reshape(n_rows - r_main, d).astype(jnp.float32)
        dd = od - td
        sse = sse + jnp.sum(dd * dd, axis=0)
    return sse


@functools.partial(jax.jit, static_argnames=("tm", "num_cores"))
def _walker2d_losses(outputs, targets, tm, num_cores):
    b, s, d = outputs.shape
    assert d == D_XT, f"expected feature dim {D_XT}, got {d}"
    n_rows = b * s
    sse = _per_feature_sse(outputs, targets, tm=tm, num_cores=num_cores)
    total = jnp.sum(sse) / (n_rows * D_XT)
    # Static 0/1 group mask matvec instead of per-group gathers.
    group_sse = jnp.asarray(_GROUP_MASK) @ sse
    groups = group_sse / (n_rows * jnp.asarray(_GROUP_SIZES))
    return total, groups


def walker2d_loss(outputs, targets, *, tm=1024, num_cores=None, device_metrics=False):
    """Mirrors Walker2DLoss.forward: returns (total_loss, metrics dict)."""
    if num_cores is None:
        num_cores = _default_num_cores()
    total, groups = _walker2d_losses(outputs, targets, tm=tm, num_cores=num_cores)
    if device_metrics:
        # Lazy variant: no host sync; caller reads metrics when convenient.
        metrics = {name: groups[i] for i, name in enumerate(_GROUP_NAMES)}
    else:
        groups_host = np.asarray(jax.device_get(groups))   # single batched D2H transfer
        metrics = {name: float(v) for name, v in zip(_GROUP_NAMES, groups_host)}
    metrics["orientation_loss"] = "N/A for Walker2D-v1"
    return total, metrics


def _reference(outputs, targets):
    o = outputs.astype(jnp.float32)
    t = targets.astype(jnp.float32)
    total = jnp.mean((o - t) ** 2)
    groups = {
        name: float(jnp.mean((o[:, :, list(idx)] - t[:, :, list(idx)]) ** 2))
        for name, idx in FEATURE_GROUPS.items()
    }
    return total, groups


def _check(total, metrics, ref_total, ref_groups, rtol=1e-4, atol=1e-6):
    assert np.allclose(np.asarray(total), np.asarray(ref_total), rtol=rtol, atol=atol)
    for name in FEATURE_GROUPS:
        assert np.allclose(metrics[name], ref_groups[name], rtol=rtol, atol=atol)


if __name__ == "__main__":
    key = jax.random.PRNGKey(0)
    k1, k2, k3, k4, k5, k6 = jax.random.split(key, 6)

    # Case 1: small "nice" shape (default tile; B*S = 1024 rows -> 16 folded rows).
    out1 = jax.random.normal(k1, (2, 512, D_XT), dtype=jnp.float32)
    tgt1 = jax.random.normal(k2, (2, 512, D_XT), dtype=jnp.float32)
    total1, metrics1 = walker2d_loss(out1, tgt1)
    total1 = jax.block_until_ready(total1)
    ref_total1, ref_groups1 = _reference(out1, tgt1)
    _check(total1, metrics1, ref_total1, ref_groups1)

    # Case 2: ragged shape (B*S = 2135) with a small tile and a forced 2-core
    # split to exercise the edge/mask branch, clamped out-of-range blocks, the
    # <64-row leftover path, and multi-step accumulation.
    out2 = jax.random.normal(k3, (5, 427, D_XT), dtype=jnp.float32)
    tgt2 = jax.random.normal(k4, (5, 427, D_XT), dtype=jnp.float32)
    total2, metrics2 = walker2d_loss(out2, tgt2, tm=8, num_cores=2)
    total2 = jax.block_until_ready(total2)
    ref_total2, ref_groups2 = _reference(out2, tgt2)
    _check(total2, metrics2, ref_total2, ref_groups2)

    # Case 3: bf16 inputs streamed directly (f32 accumulation inside the kernel).
    out3 = jax.random.normal(k5, (2, 512, D_XT), dtype=jnp.float32).astype(jnp.bfloat16)
    tgt3 = jax.random.normal(k6, (2, 512, D_XT), dtype=jnp.float32).astype(jnp.bfloat16)
    total3, metrics3 = walker2d_loss(out3, tgt3)
    total3 = jax.block_until_ready(total3)
    ref_total3, ref_groups3 = _reference(out3, tgt3)
    _check(total3, metrics3, ref_total3, ref_groups3)

    print("KERNEL_OK")
</pallas_src>

<mosaic_0001>
module attributes {stable_mosaic.version = 11 : i64} {
  func.func @_sse_kernel(%arg0: i32, %arg1: i32, %arg2: memref<16x1152xf32, #tpu.memory_space<vmem>>, %arg3: memref<16x1152xf32, #tpu.memory_space<vmem>>, %arg4: memref<8x1152xf32, #tpu.memory_space<vmem>>) attributes {dimension_semantics = [#tpu.dimension_semantics<parallel>, #tpu.dimension_semantics<arbitrary>], iteration_bounds = array<i64: 1, 1>, scalar_prefetch = 0 : i64, scratch_operands = 0 : i64, tpu.core_type = #tpu.core_type<tc>, window_params = [{transform_indices = @transform_0, window_bounds = array<i64: 16, 1152>}, {transform_indices = @transform_1, window_bounds = array<i64: 16, 1152>}, {transform_indices = @transform_2, window_bounds = array<i64: 8, 1152>}]} {
    %c0_i32 = arith.constant 0 : i32
    %0 = arith.cmpi eq, %arg1, %c0_i32 : i32
    %1 = arith.extui %0 : i1 to i32
    %c0_i32_0 = arith.constant 0 : i32
    %2 = arith.cmpi ne, %1, %c0_i32_0 : i32
    scf.if %2 {
      %cst = arith.constant 0.000000e+00 : f32
      %18 = vector.broadcast %cst : f32 to vector<8x1152xf32>
      %c0_10 = arith.constant 0 : index
      %c0_11 = arith.constant 0 : index
      %19 = vector.load %arg4[%c0_10, %c0_11] : memref<8x1152xf32, #tpu.memory_space<vmem>>, vector<8x1152xf32>
      tpu.vector_store %arg4[%c0_10, %c0_11], %18 {strides = array<i32>} : memref<8x1152xf32, #tpu.memory_space<vmem>>, vector<8x1152xf32>,
    } else {
    }
    %c0 = arith.constant 0 : index
    %c0_1 = arith.constant 0 : index
    %3 = vector.load %arg2[%c0, %c0_1] : memref<16x1152xf32, #tpu.memory_space<vmem>>, vector<16x1152xf32>
    %c0_2 = arith.constant 0 : index
    %c0_3 = arith.constant 0 : index
    %4 = vector.load %arg3[%c0_2, %c0_3] : memref<16x1152xf32, #tpu.memory_space<vmem>>, vector<16x1152xf32>
    %5 = arith.subf %3, %4 : vector<16x1152xf32>
    %6 = arith.mulf %5, %5 : vector<16x1152xf32>
    %c1_i32 = arith.constant 1 : i32
    %7 = arith.muli %arg0, %c1_i32 : i32
    %8 = arith.addi %7, %arg1 : i32
    %c16_i32 = arith.constant 16 : i32
    %9 = arith.muli %8, %c16_i32 : i32
    %c16_i32_4 = arith.constant 16 : i32
    %10 = arith.addi %9, %c16_i32_4 : i32
    %c16_i32_5 = arith.constant 16 : i32
    %11 = arith.cmpi sle, %10, %c16_i32_5 : i32
    %12 = arith.extui %11 : i1 to i32
    %c0_i32_6 = arith.constant 0 : i32
    %13 = arith.cmpi ne, %12, %c0_i32_6 : i32
    scf.if %13 {
      %c0_10 = arith.constant 0 : index
      %c0_11 = arith.constant 0 : index
      %18 = vector.load %arg4[%c0_10, %c0_11] : memref<8x1152xf32, #tpu.memory_space<vmem>>, vector<8x1152xf32>
      %19 = vector.shape_cast %6 : vector<16x1152xf32> to vector<2x8x1152xf32>
      %cst = arith.constant dense<0.000000e+00> : vector<8x1152xf32>
      %20 = vector.multi_reduction <add>, %19, %cst [0] : vector<2x8x1152xf32> to vector<8x1152xf32>
      %21 = arith.addf %18, %20 : vector<8x1152xf32>
      %c0_12 = arith.constant 0 : index
      %c0_13 = arith.constant 0 : index
      %22 = vector.load %arg4[%c0_12, %c0_13] : memref<8x1152xf32, #tpu.memory_space<vmem>>, vector<8x1152xf32>
      tpu.vector_store %arg4[%c0_12, %c0_13], %21 {strides = array<i32>} : memref<8x1152xf32, #tpu.memory_space<vmem>>, vector<8x1152xf32>,
    } else {
    }
    %c16_i32_7 = arith.constant 16 : i32
    %14 = arith.addi %9, %c16_i32_7 : i32
    %c16_i32_8 = arith.constant 16 : i32
    %15 = arith.cmpi sgt, %14, %c16_i32_8 : i32
    %16 = arith.extui %15 : i1 to i32
    %c0_i32_9 = arith.constant 0 : i32
    %17 = arith.cmpi ne, %16, %c0_i32_9 : i32
    scf.if %17 {
      %18 = tpu.iota {dimensions = array<i32: 0>} : vector<16x1xi32>
      %19 = vector.broadcast %9 : i32 to vector<16x1xi32>
      %20 = arith.addi %18, %19 : vector<16x1xi32>
      %c16_i32_10 = arith.constant 16 : i32
      %21 = vector.broadcast %c16_i32_10 : i32 to vector<16x1xi32>
      %22 = arith.cmpi slt, %20, %21 : vector<16x1xi32>
      %cst = arith.constant 0.000000e+00 : f32
      %23 = vector.shape_cast %22 : vector<16x1xi1> to vector<16x1xi1>
      %24 = vector.broadcast %23 : vector<16x1xi1> to vector<16x1152xi1>
      %25 = vector.broadcast %cst : f32 to vector<16x1152xf32>
      %26 = arith.select %24, %6, %25 : vector<16x1152xi1>, vector<16x1152xf32>
      %c0_11 = arith.constant 0 : index
      %c0_12 = arith.constant 0 : index
      %27 = vector.load %arg4[%c0_11, %c0_12] : memref<8x1152xf32, #tpu.memory_space<vmem>>, vector<8x1152xf32>
      %28 = vector.shape_cast %26 : vector<16x1152xf32> to vector<2x8x1152xf32>
      %cst_13 = arith.constant dense<0.000000e+00> : vector<8x1152xf32>
      %29 = vector.multi_reduction <add>, %28, %cst_13 [0] : vector<2x8x1152xf32> to vector<8x1152xf32>
      %30 = arith.addf %27, %29 : vector<8x1152xf32>
      %c0_14 = arith.constant 0 : index
      %c0_15 = arith.constant 0 : index
      %31 = vector.load %arg4[%c0_14, %c0_15] : memref<8x1152xf32, #tpu.memory_space<vmem>>, vector<8x1152xf32>
      tpu.vector_store %arg4[%c0_14, %c0_15], %30 {strides = array<i32>} : memref<8x1152xf32, #tpu.memory_space<vmem>>, vector<8x1152xf32>,
    } else {
    }
    return
  }
  func.func @transform_0(%arg0: i32, %arg1: i32) -> (i32, i32) {
    %c1_i32 = arith.constant 1 : i32
    %0 = arith.muli %arg0, %c1_i32 : i32
    %1 = arith.addi %0, %arg1 : i32
    %c0_i32 = arith.constant 0 : i32
    %2 = arith.minsi %1, %c0_i32 : i32
    %c0_i32_0 = arith.constant 0 : i32
    %c0_i32_1 = arith.constant 0 : i32
    return %2, %c0_i32_0 : i32, i32
  }
  func.func @transform_1(%arg0: i32, %arg1: i32) -> (i32, i32) {
    %c1_i32 = arith.constant 1 : i32
    %0 = arith.muli %arg0, %c1_i32 : i32
    %1 = arith.addi %0, %arg1 : i32
    %c0_i32 = arith.constant 0 : i32
    %2 = arith.minsi %1, %c0_i32 : i32
    %c0_i32_0 = arith.constant 0 : i32
    %c0_i32_1 = arith.constant 0 : i32
    return %2, %c0_i32_0 : i32, i32
  }
  func.func @transform_2(%arg0: i32, %arg1: i32) -> (i32, i32) {
    %c0_i32 = arith.constant 0 : i32
    %c0_i32_0 = arith.constant 0 : i32
    return %arg0, %c0_i32 : i32, i32
  }
}

</mosaic_0001>

<bundles_post_ra>
// kernel: _walker2d_losses.1
= control target key start
LH: loop header
LB: loop body
LE: loop exit
PB: predicated region body
PF: predicated region fallthrough
CT: control target
= control target key end

     0   :  { %s446_s0 = inlined_call_operand.vmem [shape: f32[16,1152], index: 0, kind: input, shape index: {}]   ;;  %s447_s1 = inlined_call_operand.vmem [shape: f32[16,1152], index: 1, kind: input, shape index: {}]   ;;  %s448_s2 = inlined_call_operand.vmem [shape: f32[8,1152], index: 2, kind: output, shape index: {}]  }
   0x1   :  { %v94_v0 = vld [vmem:[%s446_s0] sm:$0xff]  ;;  %v103_v1 = vld [vmem:[%s446_s0 + $0x48] sm:$0xff]  ;;  %v104_v6 = vld [vmem:[%s446_s0 + $0x50] sm:$0xff] }
   0x2   :  { %v112_v2 = vld [vmem:[%s447_s1] sm:$0xff]  ;;  %v121_v3 = vld [vmem:[%s447_s1 + $0x48] sm:$0xff]  ;;  %v122_v9 = vld [vmem:[%s447_s1 + $0x50] sm:$0xff] }
   0x3   :  { %v130_v4 = vsub.f32 %v94_v0, %v112_v2  ;;  %v95_v5 = vld [vmem:[%s446_s0 + $0x8] sm:$0xff]  ;;  %v139_v7 = vsub.f32 %v103_v1, %v121_v3  ;;  %v96_v10 = vld [vmem:[%s446_s0 + $0x10] sm:$0xff]  ;;  %v140_v13 = vsub.f32 %v104_v6, %v122_v9  ;;  %v105_v14 = vld [vmem:[%s446_s0 + $0x58] sm:$0xff] }
   0x4   :  { %v113_v8 = vld [vmem:[%s447_s1 + $0x8] sm:$0xff]  ;;  %v114_v15 = vld [vmem:[%s447_s1 + $0x10] sm:$0xff]  ;;  %v123_v16 = vld [vmem:[%s447_s1 + $0x58] sm:$0xff] }
   0x5   :  { %v148_v11 = vmul.f32 %v130_v4, %v130_v4  ;;  %v131_v12 = vsub.f32 %v95_v5, %v113_v8  ;;  %v157_v17 = vmul.f32 %v139_v7, %v139_v7  ;;  %v132_v18 = vsub.f32 %v96_v10, %v114_v15  ;;  %v97_v20 = vld [vmem:[%s446_s0 + $0x18] sm:$0xff]  ;;  %v106_v21 = vld [vmem:[%s446_s0 + $0x60] sm:$0xff]  ;;  %v107_v28 = vld [vmem:[%s446_s0 + $0x68] sm:$0xff] }
   0x6   :  { %v141_v19 = vsub.f32 %v105_v14, %v123_v16  ;;  %v115_v22 = vld [vmem:[%s447_s1 + $0x18] sm:$0xff]  ;;  %v158_v24 = vmul.f32 %v140_v13, %v140_v13  ;;  %v124_v25 = vld [vmem:[%s447_s1 + $0x60] sm:$0xff]  ;;  %v125_v34 = vld [vmem:[%s447_s1 + $0x68] sm:$0xff] }
   0x7   :  { %v149_v23 = vmul.f32 %v131_v12, %v131_v12  ;;  %v133_v26 = vsub.f32 %v97_v20, %v115_v22  ;;  %v98_v27 = vld [vmem:[%s446_s0 + $0x20] sm:$0xff]  ;;  %v182_v29 = vadd.f32 %v157_v17, %v148_v11  ;;  %v150_v30 = vmul.f32 %v132_v18, %v132_v18  ;;  %v99_v35 = vld [vmem:[%s446_s0 + $0x28] sm:$0xff]  ;;  %v108_v40 = vld [vmem:[%s446_s0 + $0x70] sm:$0xff] }
   0x8   :  { %v159_v31 = vmul.f32 %v141_v19, %v141_v19  ;;  %v142_v32 = vsub.f32 %v106_v21, %v124_v25  ;;  %v116_v33 = vld [vmem:[%s447_s1 + $0x20] sm:$0xff]  ;;  %v143_v39 = vsub.f32 %v107_v28, %v125_v34  ;;  %v117_v41 = vld [vmem:[%s447_s1 + $0x28] sm:$0xff]  ;;  %v126_v42 = vld [vmem:[%s447_s1 + $0x70] sm:$0xff] }
   0x9   :  { %v183_v36 = vadd.f32 %v158_v24, %v149_v23  ;;  %v151_v37 = vmul.f32 %v133_v26, %v133_v26  ;;  %v134_v38 = vsub.f32 %v98_v27, %v116_v33  ;;  %v135_v45 = vsub.f32 %v99_v35, %v117_v41  ;;  %v100_v46 = vld [vmem:[%s446_s0 + $0x30] sm:$0xff]  ;;  %v109_v47 = vld [vmem:[%s446_s0 + $0x78] sm:$0xff]  ;;  %v110_v54 = vld [vmem:[%s446_s0 + $0x80] sm:$0xff]  ;;  %200 = vst [vmem:[%s448_s2] sm:$0xff] %v182_v29 }
   0xa   :  { %v184_v43 = vadd.f32 %v159_v31, %v150_v30  ;;  %v160_v44 = vmul.f32 %v142_v32, %v142_v32  ;;  %v118_v48 = vld [vmem:[%s447_s1 + $0x30] sm:$0xff]  ;;  %v161_v50 = vmul.f32 %v143_v39, %v143_v39  ;;  %v144_v51 = vsub.f32 %v108_v40, %v126_v42  ;;  %v127_v52 = vld [vmem:[%s447_s1 + $0x78] sm:$0xff]  ;;  %v128_v59 = vld [vmem:[%s447_s1 + $0x80] sm:$0xff] }
   0xb   :  { %v152_v49 = vmul.f32 %v134_v38, %v134_v38  ;;  %v101_v53 = vld [vmem:[%s446_s0 + $0x38] sm:$0xff]  ;;  %v153_v56 = vmul.f32 %v135_v45, %v135_v45  ;;  %v136_v57 = vsub.f32 %v100_v46, %v118_v48  ;;  %v102_v60 = vld [vmem:[%s446_s0 + $0x40] sm:$0xff]  ;;  %201 = vst [vmem:[%s448_s2 + $0x8] sm:$0xff] %v183_v36  ;;  %v145_v63 = vsub.f32 %v109_v47, %v127_v52  ;;  %v111_v1 = vld [vmem:[%s446_s0 + $0x88] sm:$0xff] }
   0xc   :  { %v185_v55 = vadd.f32 %v160_v44, %v151_v37  ;;  %v119_v58 = vld [vmem:[%s447_s1 + $0x38] sm:$0xff]  ;;  %v162_v62 = vmul.f32 %v144_v51, %v144_v51  ;;  %v120_v2 = vld [vmem:[%s447_s1 + $0x40] sm:$0xff]  ;;  %v129_v3 = vld [vmem:[%s447_s1 + $0x88] sm:$0xff]  ;;  %202 = vst [vmem:[%s448_s2 + $0x10] sm:$0xff] %v184_v43  ;;  %v146_v5 = vsub.f32 %v110_v54, %v128_v59 }
   0xd   :  { %v186_v61 = vadd.f32 %v161_v50, %v152_v49  ;;  %v137_v0 = vsub.f32 %v101_v53, %v119_v58  ;;  %v154_v4 = vmul.f32 %v136_v57, %v136_v57  ;;  %v138_v6 = vsub.f32 %v102_v60, %v120_v2 }
   0xe   :  { %v187_v7 = vadd.f32 %v162_v62, %v153_v56  ;;  %v163_v8 = vmul.f32 %v145_v63, %v145_v63  ;;  %203 = vst [vmem:[%s448_s2 + $0x18] sm:$0xff] %v185_v55  ;;  %v164_v10 = vmul.f32 %v146_v5, %v146_v5  ;;  %v147_v11 = vsub.f32 %v111_v1, %v129_v3 }
   0xf   :  { %v155_v9 = vmul.f32 %v137_v0, %v137_v0  ;;  %v156_v12 = vmul.f32 %v138_v6, %v138_v6  ;;  %204 = vst [vmem:[%s448_s2 + $0x20] sm:$0xff] %v186_v61 }
  0x10   :  { %v188_v13 = vadd.f32 %v163_v8, %v154_v4  ;;  %v165_v15 = vmul.f32 %v147_v11, %v147_v11  ;;  %205 = vst [vmem:[%s448_s2 + $0x28] sm:$0xff] %v187_v7 }
  0x11   :  { %v189_v14 = vadd.f32 %v164_v10, %v155_v9 }
  0x12   :  { %v190_v16 = vadd.f32 %v165_v15, %v156_v12  ;;  %206 = vst [vmem:[%s448_s2 + $0x30] sm:$0xff] %v188_v13 }
  0x13   :  { %207 = vst [vmem:[%s448_s2 + $0x38] sm:$0xff] %v189_v14 }
  0x14   :  { %208 = vst [vmem:[%s448_s2 + $0x40] sm:$0xff] %v190_v16 }

</bundles_post_ra>
